<compile_context>
chip_gen: v5e
topology: v5e:2x2
jax: 0.10.0
libtpu: 0.0.40
codegen_flags: <defaults>
</compile_context>

<pallas_src>
import math
import jax
import jax.numpy as jnp
from jax.experimental import pallas as pl
from jax.experimental.pallas import tpu as pltpu

# ---- small, fully-VMEM-resident problem sizes implied by the module ----
B, N, C = 2, 8, 32          # batch, seq, embed_dim
NUM_HEADS = 4
HEAD_DIM = C // NUM_HEADS
MLP_HIDDEN = int(C * 4.0)   # mlp_ratio = 4.0 -> 128 (lane-dense hidden)
LN_EPS = 1e-5
SCALE = HEAD_DIM ** (-0.5)


def _erf(z):
    # Abramowitz & Stegun 7.1.26 polynomial approximation of erf (|err| < 1.5e-7),
    # built only from ops that lower cleanly in Mosaic (exp / abs / where / mul).
    a1, a2, a3, a4, a5 = (0.254829592, -0.284496736, 1.421413741,
                          -1.453152027, 1.061405429)
    p = 0.3275911
    za = jnp.abs(z)
    # Exact divide kept here (not approx reciprocal) so the erf polynomial keeps
    # its ~1.5e-7 accuracy vs torch's exact-erf GELU.
    t = 1.0 / (1.0 + p * za)
    poly = ((((a5 * t + a4) * t + a3) * t + a2) * t + a1) * t
    y = 1.0 - poly * jnp.exp(-za * za)
    return jnp.where(z < 0.0, -y, y)


def _gelu_exact(u):
    # PyTorch nn.GELU() default ('none') = exact erf-based GELU.
    return 0.5 * u * (1.0 + _erf(u * (1.0 / math.sqrt(2.0))))


def _layernorm(y, w, b):
    mu = jnp.mean(y, axis=-1, keepdims=True)
    var = jnp.mean((y - mu) ** 2, axis=-1, keepdims=True)
    return (y - mu) * jax.lax.rsqrt(var + LN_EPS) * w + b


def transformer_block_kernel(x_ref,
                             ln1_w_ref, ln1_b_ref,
                             wq_ref, bq_ref, wk_ref, bk_ref, wv_ref, bv_ref,
                             wp_ref, bp_ref,
                             ln2_w_ref, ln2_b_ref,
                             fc1_w_ref, fc1_b_ref,
                             fc2_w_ref, fc2_b_ref,
                             o_ref):
    x = x_ref[...]                                        # (N, C) — one batch row

    # ---------- attention branch: x + attn(norm1(x)) ----------
    h1 = _layernorm(x, ln1_w_ref[...], ln1_b_ref[...])                 # (N, C)
    h1_b = jnp.broadcast_to(h1[None, :, :], (NUM_HEADS, N, C))         # (H, N, C)

    # Per-head q/k/v projections as batched matmuls (batch dim = heads); weights
    # arrive pre-split per head -> zero lane slicing inside the kernel.
    q = jnp.einsum('hnc,hcd->hnd', h1_b, wq_ref[...],
                   preferred_element_type=jnp.float32) + bq_ref[...]   # (H, N, Dh)
    k = jnp.einsum('hnc,hcd->hnd', h1_b, wk_ref[...],
                   preferred_element_type=jnp.float32) + bk_ref[...]
    v = jnp.einsum('hnc,hcd->hnd', h1_b, wv_ref[...],
                   preferred_element_type=jnp.float32) + bv_ref[...]

    s = jnp.einsum('hnd,hmd->hnm', q, k,
                   preferred_element_type=jnp.float32) * SCALE         # (H, N, N)
    s = s - jnp.max(s, axis=-1, keepdims=True)
    p = jnp.exp(s)
    # softmax denominator on the EUP reciprocal slot (frees VPU slots).
    p = p * pl.reciprocal(jnp.sum(p, axis=-1, keepdims=True), approx=True)
    attn = jnp.einsum('hnm,hmd->hnd', p, v,
                      preferred_element_type=jnp.float32)              # (H, N, Dh)

    # Head merge folded into the output projection: batched per-head matmul with
    # (H, Dh, C) proj slabs, then a leading-axis reduce — no lane-axis concat.
    attn = jnp.sum(jnp.einsum('hnd,hdc->hnc', attn, wp_ref[...],
                              preferred_element_type=jnp.float32),
                   axis=0) + bp_ref[...]                               # (N, C)
    x1 = x + attn

    # ---------- MLP branch: x1 + mlp(norm2(x1)) ----------
    h2 = _layernorm(x1, ln2_w_ref[...], ln2_b_ref[...])
    f = jnp.dot(h2, fc1_w_ref[...],
                preferred_element_type=jnp.float32) + fc1_b_ref[...]   # (N, 128)
    f = _gelu_exact(f)
    f = jnp.dot(f, fc2_w_ref[...],
                preferred_element_type=jnp.float32) + fc2_b_ref[...]
    o_ref[...] = x1 + f


def init_params(key):
    ks = jax.random.split(key, 8)

    def w(k, shape, scale=0.02):
        return (scale * jax.random.normal(k, shape)).astype(jnp.float32)

    # Linear weights stored as (in, out) so y = x @ W + b == torch's x @ W.T + b.
    return dict(
        ln1_w=jnp.ones((1, C), jnp.float32),
        ln1_b=jnp.zeros((1, C), jnp.float32),
        qkv_w=w(ks[0], (C, 3 * C)),
        qkv_b=w(ks[1], (3 * C,)),
        proj_w=w(ks[2], (C, C)),
        proj_b=w(ks[3], (1, C)),
        ln2_w=jnp.ones((1, C), jnp.float32),
        ln2_b=jnp.zeros((1, C), jnp.float32),
        fc1_w=w(ks[4], (C, MLP_HIDDEN)),
        fc1_b=w(ks[5], (1, MLP_HIDDEN)),
        fc2_w=w(ks[6], (MLP_HIDDEN, C)),
        fc2_b=w(ks[7], (1, C)),
    )


def prepare_params(p):
    # qkv columns follow torch's (3, H, Dh) convention (reshape B,N,3,H,Dh).
    # Pre-split in the wrapper so the kernel never lane-slices at offsets C / 2C.
    wqkv = p['qkv_w'].reshape(C, 3, NUM_HEADS, HEAD_DIM)
    wqkv = jnp.transpose(wqkv, (1, 2, 0, 3))              # (3, H, C, Dh)
    bqkv = p['qkv_b'].reshape(3, NUM_HEADS, 1, HEAD_DIM)  # (3, H, 1, Dh)
    kp = dict(p)
    kp['wq'], kp['wk'], kp['wv'] = wqkv[0], wqkv[1], wqkv[2]   # each (H, C, Dh)
    kp['bq'], kp['bk'], kp['bv'] = bqkv[0], bqkv[1], bqkv[2]   # each (H, 1, Dh)
    # proj rows are (H, Dh) blocks -> (H, Dh, C) slabs for fused head-merge+proj.
    kp['wp'] = p['proj_w'].reshape(NUM_HEADS, HEAD_DIM, C)
    return kp


def transformer_block(x, p):
    kp = prepare_params(p)

    def full(shape):
        # whole-array block, resident across all grid steps
        return pl.BlockSpec(shape, lambda b: (0,) * len(shape))

    in_specs = [
        pl.BlockSpec((None, N, C), lambda b: (b, 0, 0)),                  # x (per-batch row)
        full((1, C)), full((1, C)),                                       # ln1 w/b
        full((NUM_HEADS, C, HEAD_DIM)), full((NUM_HEADS, 1, HEAD_DIM)),   # q w/b
        full((NUM_HEADS, C, HEAD_DIM)), full((NUM_HEADS, 1, HEAD_DIM)),   # k w/b
        full((NUM_HEADS, C, HEAD_DIM)), full((NUM_HEADS, 1, HEAD_DIM)),   # v w/b
        full((NUM_HEADS, HEAD_DIM, C)), full((1, C)),                     # proj w/b
        full((1, C)), full((1, C)),                                       # ln2 w/b
        full((C, MLP_HIDDEN)), full((1, MLP_HIDDEN)),                     # fc1 w/b
        full((MLP_HIDDEN, C)), full((1, C)),                              # fc2 w/b
    ]
    args = (x,
            kp['ln1_w'], kp['ln1_b'],
            kp['wq'], kp['bq'], kp['wk'], kp['bk'], kp['wv'], kp['bv'],
            kp['wp'], kp['proj_b'],
            kp['ln2_w'], kp['ln2_b'],
            kp['fc1_w'], kp['fc1_b'],
            kp['fc2_w'], kp['fc2_b'])
    return pl.pallas_call(
        transformer_block_kernel,
        out_shape=jax.ShapeDtypeStruct((B, N, C), jnp.float32),
        grid=(B,),
        in_specs=in_specs,
        out_specs=pl.BlockSpec((None, N, C), lambda b: (b, 0, 0)),
        compiler_params=pltpu.CompilerParams(
            dimension_semantics=("parallel",)),   # lets v7x use both TensorCores
    )(*args)


if __name__ == "__main__":
    key = jax.random.PRNGKey(0)
    k_x, k_p = jax.random.split(key)
    x = jax.random.normal(k_x, (B, N, C), dtype=jnp.float32)
    params = init_params(k_p)

    out = transformer_block(x, params)
    jax.block_until_ready(out)
    assert out.shape == (B, N, C) and out.dtype == jnp.float32
    print("KERNEL_OK")
</pallas_src>

<mosaic_0001>
module attributes {stable_mosaic.version = 11 : i64} {
  func.func @transformer_block_kernel(%arg0: i32, %arg1: memref<1x8x32xf32, #tpu.memory_space<vmem>>, %arg2: memref<1x32xf32, #tpu.memory_space<vmem>>, %arg3: memref<1x32xf32, #tpu.memory_space<vmem>>, %arg4: memref<4x32x8xf32, #tpu.memory_space<vmem>>, %arg5: memref<4x1x8xf32, #tpu.memory_space<vmem>>, %arg6: memref<4x32x8xf32, #tpu.memory_space<vmem>>, %arg7: memref<4x1x8xf32, #tpu.memory_space<vmem>>, %arg8: memref<4x32x8xf32, #tpu.memory_space<vmem>>, %arg9: memref<4x1x8xf32, #tpu.memory_space<vmem>>, %arg10: memref<4x8x32xf32, #tpu.memory_space<vmem>>, %arg11: memref<1x32xf32, #tpu.memory_space<vmem>>, %arg12: memref<1x32xf32, #tpu.memory_space<vmem>>, %arg13: memref<1x32xf32, #tpu.memory_space<vmem>>, %arg14: memref<32x128xf32, #tpu.memory_space<vmem>>, %arg15: memref<1x128xf32, #tpu.memory_space<vmem>>, %arg16: memref<128x32xf32, #tpu.memory_space<vmem>>, %arg17: memref<1x32xf32, #tpu.memory_space<vmem>>, %arg18: memref<1x8x32xf32, #tpu.memory_space<vmem>>) attributes {dimension_semantics = [#tpu.dimension_semantics<parallel>], iteration_bounds = array<i64: 2>, scalar_prefetch = 0 : i64, scratch_operands = 0 : i64, tpu.core_type = #tpu.core_type<tc>, window_params = [{transform_indices = @transform_0, window_bounds = array<i64: 1, 8, 32>}, {pipeline_mode = #tpu.pipeline_mode<synchronous>, transform_indices = @transform_1, window_bounds = array<i64: 1, 32>}, {pipeline_mode = #tpu.pipeline_mode<synchronous>, transform_indices = @transform_2, window_bounds = array<i64: 1, 32>}, {pipeline_mode = #tpu.pipeline_mode<synchronous>, transform_indices = @transform_3, window_bounds = array<i64: 4, 32, 8>}, {pipeline_mode = #tpu.pipeline_mode<synchronous>, transform_indices = @transform_4, window_bounds = array<i64: 4, 1, 8>}, {pipeline_mode = #tpu.pipeline_mode<synchronous>, transform_indices = @transform_5, window_bounds = array<i64: 4, 32, 8>}, {pipeline_mode = #tpu.pipeline_mode<synchronous>, transform_indices = @transform_6, window_bounds = array<i64: 4, 1, 8>}, {pipeline_mode = #tpu.pipeline_mode<synchronous>, transform_indices = @transform_7, window_bounds = array<i64: 4, 32, 8>}, {pipeline_mode = #tpu.pipeline_mode<synchronous>, transform_indices = @transform_8, window_bounds = array<i64: 4, 1, 8>}, {pipeline_mode = #tpu.pipeline_mode<synchronous>, transform_indices = @transform_9, window_bounds = array<i64: 4, 8, 32>}, {pipeline_mode = #tpu.pipeline_mode<synchronous>, transform_indices = @transform_10, window_bounds = array<i64: 1, 32>}, {pipeline_mode = #tpu.pipeline_mode<synchronous>, transform_indices = @transform_11, window_bounds = array<i64: 1, 32>}, {pipeline_mode = #tpu.pipeline_mode<synchronous>, transform_indices = @transform_12, window_bounds = array<i64: 1, 32>}, {pipeline_mode = #tpu.pipeline_mode<synchronous>, transform_indices = @transform_13, window_bounds = array<i64: 32, 128>}, {pipeline_mode = #tpu.pipeline_mode<synchronous>, transform_indices = @transform_14, window_bounds = array<i64: 1, 128>}, {pipeline_mode = #tpu.pipeline_mode<synchronous>, transform_indices = @transform_15, window_bounds = array<i64: 128, 32>}, {pipeline_mode = #tpu.pipeline_mode<synchronous>, transform_indices = @transform_16, window_bounds = array<i64: 1, 32>}, {transform_indices = @transform_17, window_bounds = array<i64: 1, 8, 32>}]} {
    %c0 = arith.constant 0 : index
    %c0_0 = arith.constant 0 : index
    %c0_1 = arith.constant 0 : index
    %0 = vector.load %arg1[%c0, %c0_0, %c0_1] : memref<1x8x32xf32, #tpu.memory_space<vmem>>, vector<1x8x32xf32>
    %1 = vector.shape_cast %0 : vector<1x8x32xf32> to vector<8x32xf32>
    %c0_2 = arith.constant 0 : index
    %c0_3 = arith.constant 0 : index
    %2 = vector.load %arg2[%c0_2, %c0_3] : memref<1x32xf32, #tpu.memory_space<vmem>>, vector<1x32xf32>
    %c0_4 = arith.constant 0 : index
    %c0_5 = arith.constant 0 : index
    %3 = vector.load %arg3[%c0_4, %c0_5] : memref<1x32xf32, #tpu.memory_space<vmem>>, vector<1x32xf32>
    %cst = arith.constant dense<0.000000e+00> : vector<8xf32>
    %4 = vector.multi_reduction <add>, %1, %cst [1] : vector<8x32xf32> to vector<8xf32>
    %5 = vector.shape_cast %4 : vector<8xf32> to vector<8x1xf32>
    %cst_6 = arith.constant 3.200000e+01 : f32
    %6 = vector.broadcast %cst_6 : f32 to vector<8x1xf32>
    %7 = arith.divf %5, %6 : vector<8x1xf32>
    %8 = vector.broadcast %7 : vector<8x1xf32> to vector<8x32xf32>
    %9 = arith.subf %1, %8 : vector<8x32xf32>
    %10 = arith.mulf %9, %9 : vector<8x32xf32>
    %cst_7 = arith.constant dense<0.000000e+00> : vector<8xf32>
    %11 = vector.multi_reduction <add>, %10, %cst_7 [1] : vector<8x32xf32> to vector<8xf32>
    %12 = vector.shape_cast %11 : vector<8xf32> to vector<8x1xf32>
    %cst_8 = arith.constant 3.200000e+01 : f32
    %13 = vector.broadcast %cst_8 : f32 to vector<8x1xf32>
    %14 = arith.divf %12, %13 : vector<8x1xf32>
    %15 = vector.broadcast %7 : vector<8x1xf32> to vector<8x32xf32>
    %16 = arith.subf %1, %15 : vector<8x32xf32>
    %cst_9 = arith.constant 9.99999974E-6 : f32
    %17 = vector.broadcast %cst_9 : f32 to vector<8x1xf32>
    %18 = arith.addf %14, %17 : vector<8x1xf32>
    %19 = math.rsqrt %18 : vector<8x1xf32>
    %20 = vector.broadcast %19 : vector<8x1xf32> to vector<8x32xf32>
    %21 = arith.mulf %16, %20 : vector<8x32xf32>
    %22 = vector.broadcast %2 : vector<1x32xf32> to vector<8x32xf32>
    %23 = arith.mulf %21, %22 : vector<8x32xf32>
    %24 = vector.broadcast %3 : vector<1x32xf32> to vector<8x32xf32>
    %25 = arith.addf %23, %24 : vector<8x32xf32>
    %26 = vector.shape_cast %25 : vector<8x32xf32> to vector<1x8x32xf32>
    %27 = vector.shape_cast %26 : vector<1x8x32xf32> to vector<1x8x32xf32>
    %28 = vector.broadcast %27 : vector<1x8x32xf32> to vector<4x8x32xf32>
    %c0_10 = arith.constant 0 : index
    %c0_11 = arith.constant 0 : index
    %c0_12 = arith.constant 0 : index
    %29 = vector.load %arg4[%c0_10, %c0_11, %c0_12] : memref<4x32x8xf32, #tpu.memory_space<vmem>>, vector<4x32x8xf32>
    "tpu.trace_start"() <{level = 10 : i32, message = "hnc,hcd->hnd"}> : () -> ()
    %cst_13 = arith.constant dense<0.000000e+00> : vector<4x8x8xf32>
    %30 = tpu.matmul %28, %29, %cst_13 {dimension_numbers = #tpu.dot_dimension_numbers<[2], [1], [1], [2], [0, 0, 0, 1, 1, 2], [0], [0]>} : vector<4x8x32xf32>, vector<4x32x8xf32>, vector<4x8x8xf32> -> vector<4x8x8xf32>
    "tpu.trace_stop"() : () -> ()
    %c0_14 = arith.constant 0 : index
    %c0_15 = arith.constant 0 : index
    %c0_16 = arith.constant 0 : index
    %31 = vector.load %arg5[%c0_14, %c0_15, %c0_16] : memref<4x1x8xf32, #tpu.memory_space<vmem>>, vector<4x1x8xf32>
    %32 = vector.broadcast %31 : vector<4x1x8xf32> to vector<4x8x8xf32>
    %33 = arith.addf %30, %32 : vector<4x8x8xf32>
    %c0_17 = arith.constant 0 : index
    %c0_18 = arith.constant 0 : index
    %c0_19 = arith.constant 0 : index
    %34 = vector.load %arg6[%c0_17, %c0_18, %c0_19] : memref<4x32x8xf32, #tpu.memory_space<vmem>>, vector<4x32x8xf32>
    "tpu.trace_start"() <{level = 10 : i32, message = "hnc,hcd->hnd"}> : () -> ()
    %cst_20 = arith.constant dense<0.000000e+00> : vector<4x8x8xf32>
    %35 = tpu.matmul %28, %34, %cst_20 {dimension_numbers = #tpu.dot_dimension_numbers<[2], [1], [1], [2], [0, 0, 0, 1, 1, 2], [0], [0]>} : vector<4x8x32xf32>, vector<4x32x8xf32>, vector<4x8x8xf32> -> vector<4x8x8xf32>
    "tpu.trace_stop"() : () -> ()
    %c0_21 = arith.constant 0 : index
    %c0_22 = arith.constant 0 : index
    %c0_23 = arith.constant 0 : index
    %36 = vector.load %arg7[%c0_21, %c0_22, %c0_23] : memref<4x1x8xf32, #tpu.memory_space<vmem>>, vector<4x1x8xf32>
    %37 = vector.broadcast %36 : vector<4x1x8xf32> to vector<4x8x8xf32>
    %38 = arith.addf %35, %37 : vector<4x8x8xf32>
    %c0_24 = arith.constant 0 : index
    %c0_25 = arith.constant 0 : index
    %c0_26 = arith.constant 0 : index
    %39 = vector.load %arg8[%c0_24, %c0_25, %c0_26] : memref<4x32x8xf32, #tpu.memory_space<vmem>>, vector<4x32x8xf32>
    "tpu.trace_start"() <{level = 10 : i32, message = "hnc,hcd->hnd"}> : () -> ()
    %cst_27 = arith.constant dense<0.000000e+00> : vector<4x8x8xf32>
    %40 = tpu.matmul %28, %39, %cst_27 {dimension_numbers = #tpu.dot_dimension_numbers<[2], [1], [1], [2], [0, 0, 0, 1, 1, 2], [0], [0]>} : vector<4x8x32xf32>, vector<4x32x8xf32>, vector<4x8x8xf32> -> vector<4x8x8xf32>
    "tpu.trace_stop"() : () -> ()
    %c0_28 = arith.constant 0 : index
    %c0_29 = arith.constant 0 : index
    %c0_30 = arith.constant 0 : index
    %41 = vector.load %arg9[%c0_28, %c0_29, %c0_30] : memref<4x1x8xf32, #tpu.memory_space<vmem>>, vector<4x1x8xf32>
    %42 = vector.broadcast %41 : vector<4x1x8xf32> to vector<4x8x8xf32>
    %43 = arith.addf %40, %42 : vector<4x8x8xf32>
    "tpu.trace_start"() <{level = 10 : i32, message = "hnd,hmd->hnm"}> : () -> ()
    %cst_31 = arith.constant dense<0.000000e+00> : vector<4x8x8xf32>
    %44 = tpu.matmul %33, %38, %cst_31 {dimension_numbers = #tpu.dot_dimension_numbers<[2], [2], [1], [1], [0, 0, 0, 1, 1, 1], [0], [0]>} : vector<4x8x8xf32>, vector<4x8x8xf32>, vector<4x8x8xf32> -> vector<4x8x8xf32>
    "tpu.trace_stop"() : () -> ()
    %cst_32 = arith.constant 0.353553385 : f32
    %45 = vector.broadcast %cst_32 : f32 to vector<4x8x8xf32>
    %46 = arith.mulf %44, %45 : vector<4x8x8xf32>
    %cst_33 = arith.constant dense<0xFF800000> : vector<4x8xf32>
    %47 = vector.multi_reduction <maximumf>, %46, %cst_33 [2] : vector<4x8x8xf32> to vector<4x8xf32>
    %48 = vector.shape_cast %47 : vector<4x8xf32> to vector<4x8x1xf32>
    %49 = vector.broadcast %48 : vector<4x8x1xf32> to vector<4x8x8xf32>
    %50 = arith.subf %46, %49 : vector<4x8x8xf32>
    %51 = math.exp %50 : vector<4x8x8xf32>
    %cst_34 = arith.constant dense<0.000000e+00> : vector<4x8xf32>
    %52 = vector.multi_reduction <add>, %51, %cst_34 [2] : vector<4x8x8xf32> to vector<4x8xf32>
    %53 = vector.shape_cast %52 : vector<4x8xf32> to vector<4x8x1xf32>
    %54 = tpu.reciprocal %53 {approx = true} : vector<4x8x1xf32> -> vector<4x8x1xf32>
    %55 = vector.broadcast %54 : vector<4x8x1xf32> to vector<4x8x8xf32>
    %56 = arith.mulf %51, %55 : vector<4x8x8xf32>
    "tpu.trace_start"() <{level = 10 : i32, message = "hnm,hmd->hnd"}> : () -> ()
    %cst_35 = arith.constant dense<0.000000e+00> : vector<4x8x8xf32>
    %57 = tpu.matmul %56, %43, %cst_35 {dimension_numbers = #tpu.dot_dimension_numbers<[2], [1], [1], [2], [0, 0, 0, 1, 1, 2], [0], [0]>} : vector<4x8x8xf32>, vector<4x8x8xf32>, vector<4x8x8xf32> -> vector<4x8x8xf32>
    "tpu.trace_stop"() : () -> ()
    %c0_36 = arith.constant 0 : index
    %c0_37 = arith.constant 0 : index
    %c0_38 = arith.constant 0 : index
    %58 = vector.load %arg10[%c0_36, %c0_37, %c0_38] : memref<4x8x32xf32, #tpu.memory_space<vmem>>, vector<4x8x32xf32>
    "tpu.trace_start"() <{level = 10 : i32, message = "hnd,hdc->hnc"}> : () -> ()
    %cst_39 = arith.constant dense<0.000000e+00> : vector<4x8x32xf32>
    %59 = tpu.matmul %57, %58, %cst_39 {dimension_numbers = #tpu.dot_dimension_numbers<[2], [1], [1], [2], [0, 0, 0, 1, 1, 2], [0], [0]>} : vector<4x8x8xf32>, vector<4x8x32xf32>, vector<4x8x32xf32> -> vector<4x8x32xf32>
    "tpu.trace_stop"() : () -> ()
    %cst_40 = arith.constant dense<0.000000e+00> : vector<8x32xf32>
    %60 = vector.multi_reduction <add>, %59, %cst_40 [0] : vector<4x8x32xf32> to vector<8x32xf32>
    %c0_41 = arith.constant 0 : index
    %c0_42 = arith.constant 0 : index
    %61 = vector.load %arg11[%c0_41, %c0_42] : memref<1x32xf32, #tpu.memory_space<vmem>>, vector<1x32xf32>
    %62 = vector.broadcast %61 : vector<1x32xf32> to vector<8x32xf32>
    %63 = arith.addf %60, %62 : vector<8x32xf32>
    %64 = arith.addf %1, %63 : vector<8x32xf32>
    %c0_43 = arith.constant 0 : index
    %c0_44 = arith.constant 0 : index
    %65 = vector.load %arg12[%c0_43, %c0_44] : memref<1x32xf32, #tpu.memory_space<vmem>>, vector<1x32xf32>
    %c0_45 = arith.constant 0 : index
    %c0_46 = arith.constant 0 : index
    %66 = vector.load %arg13[%c0_45, %c0_46] : memref<1x32xf32, #tpu.memory_space<vmem>>, vector<1x32xf32>
    %cst_47 = arith.constant dense<0.000000e+00> : vector<8xf32>
    %67 = vector.multi_reduction <add>, %64, %cst_47 [1] : vector<8x32xf32> to vector<8xf32>
    %68 = vector.shape_cast %67 : vector<8xf32> to vector<8x1xf32>
    %cst_48 = arith.constant 3.200000e+01 : f32
    %69 = vector.broadcast %cst_48 : f32 to vector<8x1xf32>
    %70 = arith.divf %68, %69 : vector<8x1xf32>
    %71 = vector.broadcast %70 : vector<8x1xf32> to vector<8x32xf32>
    %72 = arith.subf %64, %71 : vector<8x32xf32>
    %73 = arith.mulf %72, %72 : vector<8x32xf32>
    %cst_49 = arith.constant dense<0.000000e+00> : vector<8xf32>
    %74 = vector.multi_reduction <add>, %73, %cst_49 [1] : vector<8x32xf32> to vector<8xf32>
    %75 = vector.shape_cast %74 : vector<8xf32> to vector<8x1xf32>
    %cst_50 = arith.constant 3.200000e+01 : f32
    %76 = vector.broadcast %cst_50 : f32 to vector<8x1xf32>
    %77 = arith.divf %75, %76 : vector<8x1xf32>
    %78 = vector.broadcast %70 : vector<8x1xf32> to vector<8x32xf32>
    %79 = arith.subf %64, %78 : vector<8x32xf32>
    %cst_51 = arith.constant 9.99999974E-6 : f32
    %80 = vector.broadcast %cst_51 : f32 to vector<8x1xf32>
    %81 = arith.addf %77, %80 : vector<8x1xf32>
    %82 = math.rsqrt %81 : vector<8x1xf32>
    %83 = vector.broadcast %82 : vector<8x1xf32> to vector<8x32xf32>
    %84 = arith.mulf %79, %83 : vector<8x32xf32>
    %85 = vector.broadcast %65 : vector<1x32xf32> to vector<8x32xf32>
    %86 = arith.mulf %84, %85 : vector<8x32xf32>
    %87 = vector.broadcast %66 : vector<1x32xf32> to vector<8x32xf32>
    %88 = arith.addf %86, %87 : vector<8x32xf32>
    %c0_52 = arith.constant 0 : index
    %c0_53 = arith.constant 0 : index
    %89 = vector.load %arg14[%c0_52, %c0_53] : memref<32x128xf32, #tpu.memory_space<vmem>>, vector<32x128xf32>
    %cst_54 = arith.constant dense<0.000000e+00> : vector<8x128xf32>
    %90 = tpu.matmul %88, %89, %cst_54 {dimension_numbers = #tpu.dot_dimension_numbers<[1], [0], [0], [1], [0, 0, 1, 1], [], []>} : vector<8x32xf32>, vector<32x128xf32>, vector<8x128xf32> -> vector<8x128xf32>
    %c0_55 = arith.constant 0 : index
    %c0_56 = arith.constant 0 : index
    %91 = vector.load %arg15[%c0_55, %c0_56] : memref<1x128xf32, #tpu.memory_space<vmem>>, vector<1x128xf32>
    %92 = vector.broadcast %91 : vector<1x128xf32> to vector<8x128xf32>
    %93 = arith.addf %90, %92 : vector<8x128xf32>
    %cst_57 = arith.constant 5.000000e-01 : f32
    %94 = vector.broadcast %cst_57 : f32 to vector<8x128xf32>
    %95 = arith.mulf %94, %93 : vector<8x128xf32>
    %cst_58 = arith.constant 0.707106769 : f32
    %96 = vector.broadcast %cst_58 : f32 to vector<8x128xf32>
    %97 = arith.mulf %93, %96 : vector<8x128xf32>
    %98 = math.absf %97 : vector<8x128xf32>
    %cst_59 = arith.constant 0.327591091 : f32
    %99 = vector.broadcast %cst_59 : f32 to vector<8x128xf32>
    %100 = arith.mulf %99, %98 : vector<8x128xf32>
    %cst_60 = arith.constant 1.000000e+00 : f32
    %101 = vector.broadcast %cst_60 : f32 to vector<8x128xf32>
    %102 = arith.addf %101, %100 : vector<8x128xf32>
    %cst_61 = arith.constant 1.000000e+00 : f32
    %103 = vector.broadcast %cst_61 : f32 to vector<8x128xf32>
    %104 = arith.divf %103, %102 : vector<8x128xf32>
    %cst_62 = arith.constant 1.06140542 : f32
    %105 = vector.broadcast %cst_62 : f32 to vector<8x128xf32>
    %106 = arith.mulf %105, %104 : vector<8x128xf32>
    %cst_63 = arith.constant -1.45315206 : f32
    %107 = vector.broadcast %cst_63 : f32 to vector<8x128xf32>
    %108 = arith.addf %106, %107 : vector<8x128xf32>
    %109 = arith.mulf %108, %104 : vector<8x128xf32>
    %cst_64 = arith.constant 1.42141378 : f32
    %110 = vector.broadcast %cst_64 : f32 to vector<8x128xf32>
    %111 = arith.addf %109, %110 : vector<8x128xf32>
    %112 = arith.mulf %111, %104 : vector<8x128xf32>
    %cst_65 = arith.constant -0.284496725 : f32
    %113 = vector.broadcast %cst_65 : f32 to vector<8x128xf32>
    %114 = arith.addf %112, %113 : vector<8x128xf32>
    %115 = arith.mulf %114, %104 : vector<8x128xf32>
    %cst_66 = arith.constant 0.254829586 : f32
    %116 = vector.broadcast %cst_66 : f32 to vector<8x128xf32>
    %117 = arith.addf %115, %116 : vector<8x128xf32>
    %118 = arith.mulf %117, %104 : vector<8x128xf32>
    %cst_67 = arith.constant 0.000000e+00 : f32
    %119 = vector.broadcast %cst_67 : f32 to vector<8x128xf32>
    %120 = arith.subf %119, %98 : vector<8x128xf32>
    %121 = arith.mulf %120, %98 : vector<8x128xf32>
    %122 = math.exp %121 : vector<8x128xf32>
    %123 = arith.mulf %118, %122 : vector<8x128xf32>
    %cst_68 = arith.constant 1.000000e+00 : f32
    %124 = vector.broadcast %cst_68 : f32 to vector<8x128xf32>
    %125 = arith.subf %124, %123 : vector<8x128xf32>
    %cst_69 = arith.constant 0.000000e+00 : f32
    %126 = vector.broadcast %cst_69 : f32 to vector<8x128xf32>
    %127 = arith.cmpf olt, %97, %126 : vector<8x128xf32>
    %cst_70 = arith.constant 0.000000e+00 : f32
    %128 = vector.broadcast %cst_70 : f32 to vector<8x128xf32>
    %129 = arith.subf %128, %125 : vector<8x128xf32>
    %130 = arith.select %127, %129, %125 : vector<8x128xi1>, vector<8x128xf32>
    %cst_71 = arith.constant 1.000000e+00 : f32
    %131 = vector.broadcast %cst_71 : f32 to vector<8x128xf32>
    %132 = arith.addf %131, %130 : vector<8x128xf32>
    %133 = arith.mulf %95, %132 : vector<8x128xf32>
    %c0_72 = arith.constant 0 : index
    %c0_73 = arith.constant 0 : index
    %134 = vector.load %arg16[%c0_72, %c0_73] : memref<128x32xf32, #tpu.memory_space<vmem>>, vector<128x32xf32>
    %cst_74 = arith.constant dense<0.000000e+00> : vector<8x32xf32>
    %135 = tpu.matmul %133, %134, %cst_74 {dimension_numbers = #tpu.dot_dimension_numbers<[1], [0], [0], [1], [0, 0, 1, 1], [], []>} : vector<8x128xf32>, vector<128x32xf32>, vector<8x32xf32> -> vector<8x32xf32>
    %c0_75 = arith.constant 0 : index
    %c0_76 = arith.constant 0 : index
    %136 = vector.load %arg17[%c0_75, %c0_76] : memref<1x32xf32, #tpu.memory_space<vmem>>, vector<1x32xf32>
    %137 = vector.broadcast %136 : vector<1x32xf32> to vector<8x32xf32>
    %138 = arith.addf %135, %137 : vector<8x32xf32>
    %139 = arith.addf %64, %138 : vector<8x32xf32>
    %c0_77 = arith.constant 0 : index
    %c0_78 = arith.constant 0 : index
    %c0_79 = arith.constant 0 : index
    %140 = vector.load %arg18[%c0_77, %c0_78, %c0_79] : memref<1x8x32xf32, #tpu.memory_space<vmem>>, vector<1x8x32xf32>
    %141 = vector.shape_cast %140 : vector<1x8x32xf32> to vector<8x32xf32>
    %142 = vector.shape_cast %139 : vector<8x32xf32> to vector<1x8x32xf32>
    tpu.vector_store %arg18[%c0_77, %c0_78, %c0_79], %142 {strides = array<i32>} : memref<1x8x32xf32, #tpu.memory_space<vmem>>, vector<1x8x32xf32>,
    return
  }
  func.func @transform_0(%arg0: i32) -> (i32, i32, i32) {
    %c0_i32 = arith.constant 0 : i32
    %c0_i32_0 = arith.constant 0 : i32
    %c0_i32_1 = arith.constant 0 : i32
    return %arg0, %c0_i32, %c0_i32_0 : i32, i32, i32
  }
  func.func @transform_1(%arg0: i32) -> (i32, i32) {
    %c0_i32 = arith.constant 0 : i32
    %c0_i32_0 = arith.constant 0 : i32
    %c0_i32_1 = arith.constant 0 : i32
    return %c0_i32, %c0_i32_0 : i32, i32
  }
  func.func @transform_2(%arg0: i32) -> (i32, i32) {
    %c0_i32 = arith.constant 0 : i32
    %c0_i32_0 = arith.constant 0 : i32
    %c0_i32_1 = arith.constant 0 : i32
    return %c0_i32, %c0_i32_0 : i32, i32
  }
  func.func @transform_3(%arg0: i32) -> (i32, i32, i32) {
    %c0_i32 = arith.constant 0 : i32
    %c0_i32_0 = arith.constant 0 : i32
    %c0_i32_1 = arith.constant 0 : i32
    %c0_i32_2 = arith.constant 0 : i32
    return %c0_i32, %c0_i32_0, %c0_i32_1 : i32, i32, i32
  }
  func.func @transform_4(%arg0: i32) -> (i32, i32, i32) {
    %c0_i32 = arith.constant 0 : i32
    %c0_i32_0 = arith.constant 0 : i32
    %c0_i32_1 = arith.constant 0 : i32
    %c0_i32_2 = arith.constant 0 : i32
    return %c0_i32, %c0_i32_0, %c0_i32_1 : i32, i32, i32
  }
  func.func @transform_5(%arg0: i32) -> (i32, i32, i32) {
    %c0_i32 = arith.constant 0 : i32
    %c0_i32_0 = arith.constant 0 : i32
    %c0_i32_1 = arith.constant 0 : i32
    %c0_i32_2 = arith.constant 0 : i32
    return %c0_i32, %c0_i32_0, %c0_i32_1 : i32, i32, i32
  }
  func.func @transform_6(%arg0: i32) -> (i32, i32, i32) {
    %c0_i32 = arith.constant 0 : i32
    %c0_i32_0 = arith.constant 0 : i32
    %c0_i32_1 = arith.constant 0 : i32
    %c0_i32_2 = arith.constant 0 : i32
    return %c0_i32, %c0_i32_0, %c0_i32_1 : i32, i32, i32
  }
  func.func @transform_7(%arg0: i32) -> (i32, i32, i32) {
    %c0_i32 = arith.constant 0 : i32
    %c0_i32_0 = arith.constant 0 : i32
    %c0_i32_1 = arith.constant 0 : i32
    %c0_i32_2 = arith.constant 0 : i32
    return %c0_i32, %c0_i32_0, %c0_i32_1 : i32, i32, i32
  }
  func.func @transform_8(%arg0: i32) -> (i32, i32, i32) {
    %c0_i32 = arith.constant 0 : i32
    %c0_i32_0 = arith.constant 0 : i32
    %c0_i32_1 = arith.constant 0 : i32
    %c0_i32_2 = arith.constant 0 : i32
    return %c0_i32, %c0_i32_0, %c0_i32_1 : i32, i32, i32
  }
  func.func @transform_9(%arg0: i32) -> (i32, i32, i32) {
    %c0_i32 = arith.constant 0 : i32
    %c0_i32_0 = arith.constant 0 : i32
    %c0_i32_1 = arith.constant 0 : i32
    %c0_i32_2 = arith.constant 0 : i32
    return %c0_i32, %c0_i32_0, %c0_i32_1 : i32, i32, i32
  }
  func.func @transform_10(%arg0: i32) -> (i32, i32) {
    %c0_i32 = arith.constant 0 : i32
    %c0_i32_0 = arith.constant 0 : i32
    %c0_i32_1 = arith.constant 0 : i32
    return %c0_i32, %c0_i32_0 : i32, i32
  }
  func.func @transform_11(%arg0: i32) -> (i32, i32) {
    %c0_i32 = arith.constant 0 : i32
    %c0_i32_0 = arith.constant 0 : i32
    %c0_i32_1 = arith.constant 0 : i32
    return %c0_i32, %c0_i32_0 : i32, i32
  }
  func.func @transform_12(%arg0: i32) -> (i32, i32) {
    %c0_i32 = arith.constant 0 : i32
    %c0_i32_0 = arith.constant 0 : i32
    %c0_i32_1 = arith.constant 0 : i32
    return %c0_i32, %c0_i32_0 : i32, i32
  }
  func.func @transform_13(%arg0: i32) -> (i32, i32) {
    %c0_i32 = arith.constant 0 : i32
    %c0_i32_0 = arith.constant 0 : i32
    %c0_i32_1 = arith.constant 0 : i32
    return %c0_i32, %c0_i32_0 : i32, i32
  }
  func.func @transform_14(%arg0: i32) -> (i32, i32) {
    %c0_i32 = arith.constant 0 : i32
    %c0_i32_0 = arith.constant 0 : i32
    %c0_i32_1 = arith.constant 0 : i32
    return %c0_i32, %c0_i32_0 : i32, i32
  }
  func.func @transform_15(%arg0: i32) -> (i32, i32) {
    %c0_i32 = arith.constant 0 : i32
    %c0_i32_0 = arith.constant 0 : i32
    %c0_i32_1 = arith.constant 0 : i32
    return %c0_i32, %c0_i32_0 : i32, i32
  }
  func.func @transform_16(%arg0: i32) -> (i32, i32) {
    %c0_i32 = arith.constant 0 : i32
    %c0_i32_0 = arith.constant 0 : i32
    %c0_i32_1 = arith.constant 0 : i32
    return %c0_i32, %c0_i32_0 : i32, i32
  }
  func.func @transform_17(%arg0: i32) -> (i32, i32, i32) {
    %c0_i32 = arith.constant 0 : i32
    %c0_i32_0 = arith.constant 0 : i32
    %c0_i32_1 = arith.constant 0 : i32
    return %arg0, %c0_i32, %c0_i32_0 : i32, i32, i32
  }
}

</mosaic_0001>

<bundles_post_ra>
// kernel: tpu_custom_call.1
= control target key start
LH: loop header
LB: loop body
LE: loop exit
PB: predicated region body
PF: predicated region fallthrough
CT: control target
= control target key end

     0   :  { %s2206_s0 = inlined_call_operand.vmem [shape: f32[2,8,32], index: 0, kind: input, shape index: {}]   ;;  %s2207_s1 = inlined_call_operand.vmem [shape: f32[1,32], index: 1, kind: input, shape index: {}]   ;;  %s2208_s2 = inlined_call_operand.vmem [shape: f32[1,32], index: 2, kind: input, shape index: {}]   ;;  %s2209_s3 = inlined_call_operand.vmem [shape: f32[4,32,8], index: 3, kind: input, shape index: {}]   ;;  %s2210_s4 = inlined_call_operand.vmem [shape: f32[4,1,8], index: 4, kind: input, shape index: {}]   ;;  %s2211_s5 = inlined_call_operand.vmem [shape: f32[4,32,8], index: 5, kind: input, shape index: {}]   ;;  %s2212_s6 = inlined_call_operand.vmem [shape: f32[4,1,8], index: 6, kind: input, shape index: {}]   ;;  %s2213_s7 = inlined_call_operand.vmem [shape: f32[4,32,8], index: 7, kind: input, shape index: {}]   ;;  %s2214_s8 = inlined_call_operand.vmem [shape: f32[4,1,8], index: 8, kind: input, shape index: {}]   ;;  %s2215_s9 = inlined_call_operand.vmem [shape: f32[4,8,32], index: 9, kind: input, shape index: {}]   ;;  %s2216_s10 = inlined_call_operand.vmem [shape: f32[1,32], index: 10, kind: input, shape index: {}]   ;;  %s2217_s11 = inlined_call_operand.vmem [shape: f32[1,32], index: 11, kind: input, shape index: {}]   ;;  %s2218_s12 = inlined_call_operand.vmem [shape: f32[1,32], index: 12, kind: input, shape index: {}]   ;;  %s2219_s13 = inlined_call_operand.vmem [shape: f32[32,128], index: 13, kind: input, shape index: {}]   ;;  %s2220_s14 = inlined_call_operand.vmem [shape: f32[1,128], index: 14, kind: input, shape index: {}]   ;;  %s2221_s15 = inlined_call_operand.vmem [shape: f32[128,32], index: 15, kind: input, shape index: {}]   ;;  %s2222_s16 = inlined_call_operand.vmem [shape: f32[1,32], index: 16, kind: input, shape index: {}]   ;;  %s2223_s17 = inlined_call_operand.hbm [shape: f32[2,8,32], index: 17, kind: output, shape index: {}]  }
   0x1   :  { %2228 = sst [smem:[#allocation9_spill]] %s2206_s0 }
   0x2   :  { %2229 = sst [smem:[#allocation10_spill]] %s2207_s1 }
   0x3   :  { %2230 = sst [smem:[#allocation11_spill]] %s2208_s2 }
   0x4   :  { %2231 = sst [smem:[#allocation12_spill]] %s2209_s3 }
   0x5   :  { %22 = vsyncpa [#allocation3], 0 }
   0x6   :  { %24 = vsyncpa [#allocation3 + $0x1], 0  ;;  %s1777_s24 = smov 0   ;;  %s1779_s25 = smov 0  }
   0x7   :  { %s1781_s26 = smov 0   ;;  %s1783_s27 = smov 0  }
   0x8 LB: > { %2232 = sst [smem:[#allocation5_spill]] %s1680_s26  ;;  %s1798_s28 = sadd.s32 4294967295, %s1684_s27   ;;  %s1684_s27 = sphi %s1783_s27, %s2243_s27   ;;  %s1680_s26 = sphi %s1781_s26, %s2245_s26   ;;  %s1676_s25 = sphi %s1779_s25, %s2247_s25   ;;  %s1672_s24 = sphi %s1777_s24, %s2246_s24  }
   0x9   : > { %s1498_s29 = sadd.s32 4294967294, %s1684_s27   ;;  %s1802_s0 = sadd.s32 1, %s1684_s27  }
   0xa   : > { %2233 = sst [smem:[#allocation6_spill]] %s1802_s0  ;;  %s399_s30 = sadd.s32 1, %s1680_s26 }
   0xb   : > { %s396_s18 = ssub.s32 %s1684_s27, %s1802_s0  ;;  %p409_p0 = scmp.ne.s32.totalorder %s1680_s26, %s1676_s25 }
   0xc   : > { %p397_p1 = scmp.eq.s32.totalorder %s396_s18, 0  ;;  %p410_p2 = scmp.eq.s32.totalorder %s1798_s28, 1 }
   0xd   : > { %p415_p3 = scmp.ne.s32.totalorder %s1676_s25, %s1672_s24  ;;  %p416_p4 = scmp.eq.s32.totalorder %s1498_s29, 1 }
   0xe   : > { %s1813_s19 = scalar_select %p397_p1, %s1680_s26, %s399_s30  }
   0xf   : > { %p1815_p5 = por %p410_p2, %p409_p0  ;;  %p1819_p6 = por %p416_p4, %p415_p3 }
  0x10   : > { %2234 = sst [smem:[#allocation7_spill]] %s1813_s19  ;;  %p1501_p7 = scmp.ge.s32.totalorder %s1684_s27, 1 }
  0x11   : > { %s2236_s20 = scalar_select %p1819_p6, 1, 0 }
  0x12   : > { %p489_p8 = scmp.lt.s32.totalorder %s1684_s27, 3 }
  0x13   : > { %2237 = sst [smem:[#allocation8_spill]] %s2236_s20 }
  0x14   : > { %p490_p9 = pnand %p1501_p7, %p489_p8 }
  0x15   : > { %p540_p10 = scmp.lt.s32.totalorder (!%p490_p9), %s1798_s28, 1  ;;  %s2238_s30 = sld [smem:[#allocation9_spill]] (!%p490_p9) }
  0x16   : > { %493 = sbr.rel (%p490_p9) target bundleno = 1703 (0x6a7), region = 88  ;;  %s2239_s3 = sld [smem:[#allocation12_spill]] (!%p490_p9) }
  0x17   : > { %s2240_s0 = sld [smem:[#allocation10_spill]] (!%p490_p9)  ;;  %s1534_s29 = sshll.u32 (!%p490_p9), %s1798_s28, 3 }
  0x18   : > { %s2241_s2 = sld [smem:[#allocation11_spill]] (!%p490_p9) }
  0x1b   : > { %s541_s21 = scalar_select %p540_p10, %s1798_s28, 1  ;;  %vm547_vm0 = vcmask 261120   ;;  %v1686_v2 = vmov 32.0   ;;  %v819_v17 = vld [vmem:[%s2213_s7 + $0x38] sm:$0xff]  ;;  %v818_v21 = vld [vmem:[%s2213_s7 + $0x30] sm:$0xff]  ;;  %v817_v25 = vld [vmem:[%s2213_s7 + $0x28] sm:$0xff] }
  0x1c   : > { %1596 = vrcp.f32 %v1686_v2  ;;  %v588_v14 = vld [vmem:[%s2239_s3 + $0x18] sm:$0xff]  ;;  %876 = vmatpush.msra.mxu1 %v819_v17  ;;  %v587_v18 = vld [vmem:[%s2239_s3 + $0x10] sm:$0xff]  ;;  %v586_v22 = vld [vmem:[%s2239_s3 + $0x8] sm:$0xff]  ;;  %vm924_vm5 = vcmask 64512  }
  0x1d   : > { %s1503_s22 = sshll.u32 %s541_s21, 3  ;;  %v592_v15 = vld [vmem:[%s2239_s3 + $0x38] sm:$0xff]  ;;  %632 = vmatpush.msra.mxu0 %v588_v14  ;;  %v591_v19 = vld [vmem:[%s2239_s3 + $0x30] sm:$0xff]  ;;  %v590_v23 = vld [vmem:[%s2239_s3 + $0x28] sm:$0xff] }
  0x1e   : > { %s543_s18 = scalar_lea.vmem %s2238_s30, %s1503_s22  ;;  %v600_v16 = vld [vmem:[%s2239_s3 + $0x78] sm:$0xff]  ;;  %652 = vmatpush.msra.mxu2 %v592_v15  ;;  %v599_v20 = vld [vmem:[%s2239_s3 + $0x70] sm:$0xff]  ;;  %877 = vmatpush.msra.mxu1 %v818_v21  ;;  %v598_v24 = vld [vmem:[%s2239_s3 + $0x68] sm:$0xff]  ;;  %s537_s22 = sand.u32 1, %s1676_s25  }
  0x1f   : > { %v1830_v0 = vld [vmem:[%s543_s18] sm:$0xff]  ;;  %692 = vmatpush.msra.mxu3 %v600_v16  ;;  %633 = vmatpush.msra.mxu0 %v587_v18  ;;  %v596_v30 = vld [vmem:[%s2239_s3 + $0x58] sm:$0xff]  ;;  %v595_v33 = vld [vmem:[%s2239_s3 + $0x50] sm:$0xff]  ;;  %s1502_s23 = sshll.u32 %s537_s22, 3  ;;  %s1424_s28 = scalar_lea.sflag [#allocation3], %s537_s22 }
  0x20   : > { %v548_v1 = vsel %vm547_vm0, %v1830_v0, 0.0  ;;  %653 = vmatpush.msra.mxu2 %v591_v19  ;;  %878 = vmatpush.msra.mxu1 %v817_v25  ;;  %v585_v26 = vld [vmem:[%s2239_s3] sm:$0xff]  ;;  %v703_v31 = vld [vmem:[%s2211_s5 + $0x18] sm:$0xff]  ;;  %v702_v34 = vld [vmem:[%s2211_s5 + $0x10] sm:$0xff]  ;;  %s539_s20 = scalar_lea.vmem [#allocation2], %s1502_s23  ;;  %s1642_s23 = scalar_lea.hbm %s2223_s17, 16 }
  0x21   : > { %549 = vadd.xlane.f32.xlu0 %v548_v1  ;;  %693 = vmatpush.msra.mxu3 %v599_v20  ;;  %v589_v27 = vld [vmem:[%s2239_s3 + $0x20] sm:$0xff]  ;;  %v707_v32 = vld [vmem:[%s2211_s5 + $0x38] sm:$0xff]  ;;  %v706_v35 = vld [vmem:[%s2211_s5 + $0x30] sm:$0xff]  ;;  %s1436_s21 = sshll.u32 %s539_s20, 4  ;;  %s1437_s21 = int_to_ptr.vmem [resolvable:$true] %s1436_s21 }
  0x22   : > { %v1597_v3 = vpop.eup %1596  ;;  %634 = vmatpush.msra.mxu0 %v586_v22  ;;  %654 = vmatpush.msra.mxu2 %v590_v23  ;;  %v597_v28 = vld [vmem:[%s2239_s3 + $0x60] sm:$0xff]  ;;  %v594_v37 = vld [vmem:[%s2239_s3 + $0x48] sm:$0xff]  ;;  %v711_v57 = vld [vmem:[%s2211_s5 + $0x58] sm:$0xff] }
  0x23   : > { %v552_v4 = vmul.f32 32.0, %v1597_v3  ;;  %vm556_vm1 = vweird.f32 %v1597_v3  ;;  %694 = vmatpush.msra.mxu3 %v598_v24  ;;  %v816_v29 = vld [vmem:[%s2213_s7 + $0x20] sm:$0xff]  ;;  %v701_v38 = vld [vmem:[%s2211_s5 + $0x8] sm:$0xff]  ;;  %v715_v58 = vld [vmem:[%s2211_s5 + $0x78] sm:$0xff] }
  0x24   : > { %635 = vmatpush.msra.mxu0 %v585_v26  ;;  %655 = vmatpush.msra.mxu2 %v589_v27  ;;  %v705_v40 = vld [vmem:[%s2211_s5 + $0x28] sm:$0xff]  ;;  %v593_v41 = vld [vmem:[%s2239_s3 + $0x40] sm:$0xff]  ;;  %v815_v59 = vld [vmem:[%s2213_s7 + $0x18] sm:$0xff] }
  0x25   : > { %v553_v5 = vsub.f32 1.0, %v552_v4  ;;  %695 = vmatpush.msra.mxu3 %v597_v28  ;;  %879 = vmatpush.msra.mxu1 %v816_v29  ;;  %v700_v42 = vld [vmem:[%s2211_s5] sm:$0xff]  ;;  %v710_v60 = vld [vmem:[%s2211_s5 + $0x50] sm:$0xff]  ;;  %v709_v63 = vld [vmem:[%s2211_s5 + $0x48] sm:$0xff] }
  0x26   : > { %672 = vmatpush.msrb.mxu2 %v596_v30  ;;  %744 = vmatpush.msrb.mxu0 %v703_v31  ;;  %v704_v44 = vld [vmem:[%s2211_s5 + $0x20] sm:$0xff]  ;;  %v714_v61 = vld [vmem:[%s2211_s5 + $0x70] sm:$0xff]  ;;  %v713_v1 = vld [vmem:[%s2211_s5 + $0x68] sm:$0xff] }
  0x27   : > { %v554_v6 = vmul.f32 %v1597_v3, %v553_v5  ;;  %764 = vmatpush.msrb.mxu3 %v707_v32  ;;  %v1577_v51 = vld [vmem:[%s2240_s0] ss:$0 sm:$0xff]  ;;  %v814_v62 = vld [vmem:[%s2213_s7 + $0x10] sm:$0xff]  ;;  %v813_v2 = vld [vmem:[%s2213_s7 + $0x8] sm:$0xff]  ;;  %s1434_s0 = scalar_lea.hbm %s2223_s17, %s1534_s29 }
  0x28   : > { %673 = vmatpush.msrb.mxu2 %v595_v33  ;;  %745 = vmatpush.msrb.mxu0 %v702_v34  ;;  %v1578_v53 = vld [vmem:[%s2241_s2] ss:$0 sm:$0xff]  ;;  %v1585_v23 = vld [vmem:[%s2212_s6 + $0x1] ss:$0 sm:$0xff]  ;;  %s1438_s2 = sshll.u32 %s1434_s0, 4  ;;  %s1439_s2 = int_to_ptr.hbm [resolvable:$true] %s1438_s2 }
  0x29   : > { %v555_v7 = vadd.f32 %v1597_v3, %v554_v6  ;;  %765 = vmatpush.msrb.mxu3 %v706_v35  ;;  %v712_v4 = vld [vmem:[%s2211_s5 + $0x60] sm:$0xff]  ;;  %v823_v6 = vld [vmem:[%s2213_s7 + $0x58] sm:$0xff]  ;;  %s1636_s3 = sshra.s32 %s1439_s2, 4  ;;  %s1637_s3 = int_to_ptr.hbm [resolvable:$true] %s1636_s3 }
  0x2a   : > { %674 = vmatpush.msrb.mxu2 %v594_v37  ;;  %746 = vmatpush.msrb.mxu0 %v701_v38  ;;  %v812_v5 = vld [vmem:[%s2213_s7] sm:$0xff]  ;;  %s1638_s30 = scalar_lea.hbm %s1637_s3, 8  ;;  %p1643_p0 = scmp.lt.s32.totalorder %s1637_s3, %s2223_s17 }
  0x2b   : > { %v1834_v8 = vsel %vm556_vm1, %v1597_v3, %v555_v7  ;;  %766 = vmatpush.msrb.mxu3 %v705_v40  ;;  %v708_v3 = vld [vmem:[%s2211_s5 + $0x40] sm:$0xff]  ;;  %v827_v7 = vld [vmem:[%s2213_s7 + $0x78] sm:$0xff]  ;;  %p1639_p11 = scmp.ne.s32.totalorder %s1637_s3, %s1638_s30  ;;  %p1644_p1 = scmp.lt.s32.totalorder %s1642_s23, %s1638_s30 }
  0x2c   : > { %675 = vmatpush.msrb.mxu2 %v593_v41  ;;  %747 = vmatpush.msrb.mxu0 %v700_v42  ;;  %v824_v14 = vld [vmem:[%s2213_s7 + $0x60] sm:$0xff] }
  0x2d   : > { %767 = vmatpush.msrb.mxu3 %v704_v44  ;;  %v1583_v16 = vld [vmem:[%s2212_s6] ss:$0 sm:$0xff]  ;;  %v1580_v24 = vld [vmem:[%s2214_s8 + $0x1] ss:$0 sm:$0xff]  ;;  %v1587_v35 = vld [vmem:[%s2212_s6 + $0x2] ss:$0 sm:$0xff]  ;;  %p1640_p12 = pnand %p1639_p11, %p1815_p5  ;;  %p1645_p2 = por %p1644_p1, %p1643_p0 }
  0x2e   : > { %v1579_v19 = vld [vmem:[%s2210_s4] ss:$0 sm:$0xff]  ;;  %v1581_v28 = vld [vmem:[%s2210_s4 + $0x1] ss:$0 sm:$0xff]  ;;  %v1584_v37 = vld [vmem:[%s2210_s4 + $0x2] ss:$0 sm:$0xff] }
  0x2f   : > { %v1586_v25 = vld [vmem:[%s2214_s8] ss:$0 sm:$0xff]  ;;  %p1641_p13 = pneg %p1640_p12 }
  0x31   : > { %p1646_p3 = pnand %p1645_p2, %p1641_p13 }
  0x94   : > { %v550_v9 = vpop.xlane.xlu0 %549 }
  0x95   : > { %v558_v10 = vmul.f32 %v1834_v8, %v550_v9  ;;  %v822_v9 = vld [vmem:[%s2213_s7 + $0x50] sm:$0xff] }
  0x97   : > { %v1838_v11 = vsub.f32 %v1830_v0, %v558_v10  ;;  %v826_v10 = vld [vmem:[%s2213_s7 + $0x70] sm:$0xff] }
  0x99   : > { %v560_v12 = vmul.f32 %v1838_v11, %v1838_v11 }
  0x9b   : > { %v561_v13 = vsel %vm547_vm0, %v560_v12, 0.0  ;;  %v825_v12 = vld [vmem:[%s2213_s7 + $0x68] sm:$0xff] }
  0x9c   : > { %562 = vadd.xlane.f32.xlu0 %v561_v13  ;;  %v820_v13 = vld [vmem:[%s2213_s7 + $0x40] sm:$0xff] }
 0x10f   : > { %v563_v36 = vpop.xlane.xlu0 %562 }
 0x110   : > { %v564_v39 = vmul.f32 %v563_v36, %v1834_v8  ;;  %v1588_v36 = vld [vmem:[%s2212_s6 + $0x3] ss:$0 sm:$0xff] }
 0x112   : > { %v565_v43 = vadd.f32 1e-05, %v564_v39  ;;  %v1582_v39 = vld [vmem:[%s2210_s4 + $0x3] ss:$0 sm:$0xff] }
 0x114   : > { %1598 = vrsqrt.f32 %v565_v43  ;;  %vm572_vm3 = vweird.f32 %v565_v43 }
 0x11a   : > { %v1599_v45 = vpop.eup %1598 }
 0x11b   : > { %v567_v46 = vmul.f32 %v1599_v45, %v565_v43  ;;  %vm573_vm2 = vweird.f32 %v1599_v45 }
 0x11c   : > { %vm574_vm4 = vmor %vm572_vm3, %vm573_vm2 }
 0x11d   : > { %v568_v47 = vmul.f32 %v1599_v45, %v567_v46  ;;  %v1590_v46 = vld [vmem:[%s2214_s8 + $0x3] ss:$0 sm:$0xff] }
 0x11f   : > { %v569_v48 = vmul.f32 0.5, %v568_v47 }
 0x121   : > { %v570_v49 = vsub.f32 1.5, %v569_v48 }
 0x123   : > { %v571_v50 = vmul.f32 %v1599_v45, %v570_v49 }
 0x125   : > { %v575_v52 = vsel %vm574_vm4, %v1599_v45, %v571_v50  ;;  %v1589_v45 = vld [vmem:[%s2214_s8 + $0x2] ss:$0 sm:$0xff] }
 0x126   : > { %v576_v54 = vmul.f32 %v575_v52, %v1838_v11  ;;  %v821_v11 = vld [vmem:[%s2213_s7 + $0x48] sm:$0xff] }
 0x128   : > { %v580_v55 = vmul.f32 %v1577_v51, %v576_v54 }
 0x12a   : > { %v584_v56 = vadd.f32 %v1578_v53, %v580_v55 }
 0x12c   : > { %1504 = vmatmul.msk.f32.vlgmr.msra.gmra.mxu0 %vm547_vm0, %v584_v56  ;;  %1505 = vmatmul.msk.f32.vlgmr.msra.gmra.mxu2 %vm547_vm0, %v584_v56 }
 0x12d   : > { %1507 = vmatmul.msk.f32.vlgmr.msra.gmra.mxu3 %vm547_vm0, %v584_v56  ;;  %1513 = vmatmul.msk.f32.vlgmr.msra.gmra.mxu1 %vm547_vm0, %v584_v56 }
 0x12e   : > { %784 = vmatpush.msra.mxu2 %v711_v57  ;;  %804 = vmatpush.msra.mxu3 %v715_v58 }
 0x12f   : > { %856 = vmatpush.msra.mxu0 %v815_v59 }
 0x130   : > { %785 = vmatpush.msra.mxu2 %v710_v60  ;;  %805 = vmatpush.msra.mxu3 %v714_v61 }
 0x131   : > { %857 = vmatpush.msra.mxu0 %v814_v62 }
 0x132   : > { %786 = vmatpush.msra.mxu2 %v709_v63  ;;  %806 = vmatpush.msra.mxu3 %v713_v1 }
 0x133   : > { %858 = vmatpush.msra.mxu0 %v813_v2 }
 0x134   : > { %1506 = vmatmul.msk.f32.vlgmr.msrb.gmra.mxu2 %vm547_vm0, %v584_v56  ;;  %1508 = vmatmul.msk.f32.vlgmr.msrb.gmra.mxu0 %vm547_vm0, %v584_v56 }
 0x135   : > { %1509 = vmatmul.msk.f32.vlgmr.msrb.gmra.mxu3 %vm547_vm0, %v584_v56  ;;  %787 = vmatpush.msra.mxu2 %v708_v3 }
 0x136   : > { %807 = vmatpush.msra.mxu3 %v712_v4  ;;  %859 = vmatpush.msra.mxu0 %v812_v5 }
 0x137   : > { %896 = vmatpush.msrb.mxu2 %v823_v6 }
 0x138   : > { %916 = vmatpush.msrb.mxu3 %v827_v7 }
 0x139   : > { %897 = vmatpush.msrb.mxu2 %v822_v9 }
 0x13a   : > { %917 = vmatpush.msrb.mxu3 %v826_v10 }
 0x13b   : > { %898 = vmatpush.msrb.mxu2 %v821_v11 }
 0x13c   : > { %918 = vmatpush.msrb.mxu3 %v825_v12  ;;  %1510 = vmatmul.msk.f32.vlgmr.msra.gmra.mxu2 %vm547_vm0, %v584_v56 }
 0x13d   : > { %1512 = vmatmul.msk.f32.vlgmr.msra.gmra.mxu0 %vm547_vm0, %v584_v56  ;;  %1511 = vmatmul.msk.f32.vlgmr.msra.gmra.mxu3 %vm547_vm0, %v584_v56 }
 0x13e   : > { %899 = vmatpush.msrb.mxu2 %v820_v13  ;;  %919 = vmatpush.msrb.mxu3 %v824_v14 }
 0x144   : > { %1514 = vmatmul.msk.f32.vlgmr.msrb.gmra.mxu2 %vm547_vm0, %v584_v56 }
 0x145   : > { %1515 = vmatmul.msk.f32.vlgmr.msrb.gmra.mxu3 %vm547_vm0, %v584_v56 }
 0x1a9   : > { %v637_v15 = vpop.f32.mrf.mxu0 }
 0x1aa   : > { %v638_v22 = vadd.f32 %v1579_v19, %v637_v15  ;;  %v881_v26 = vpop.f32.mrf.mxu1 }
 0x1ab   : > { %v882_v32 = vadd.f32 %v1580_v24, %v881_v26 }
 0x1af   : > { %v657_v17 = vpop.f32.mrf.mxu2 }
 0x1b0   : > { %v697_v18 = vpop.f32.mrf.mxu3  ;;  %v658_v34 = vadd.f32 %v1581_v28, %v657_v17 }
 0x1b1   : > { %v749_v20 = vpop.f32.mrf.mxu0  ;;  %v698_v44 = vadd.f32 %v1582_v39, %v697_v18 }
 0x1b2   : > { %v750_v21 = vadd.f32 %v1583_v16, %v749_v20 }
 0x1b4   : > { %1516 = vmatpush.xpose.msk.msrb.mxu0 %vm924_vm5, %v750_v21 }
 0x1b7   : > { %v677_v27 = vpop.f32.mrf.mxu2  ;;  %1517 = vmatmul.msk.f32.vlgmr.msrb.gmra.mxu0 %vm924_vm5, %v638_v22 }
 0x1b8   : > { %v769_v29 = vpop.f32.mrf.mxu3  ;;  %v678_v43 = vadd.f32 %v1584_v37, %v677_v27 }
 0x1b9   : > { %v770_v30 = vadd.f32 %v1585_v23, %v769_v29 }
 0x1ba   : > { %v861_v31 = vpop.f32.mrf.mxu0 }
 0x1bb   : > { %v862_v33 = vadd.f32 %v1586_v25, %v861_v31  ;;  %1518 = vmatpush.xpose.msk.msrb.mxu1 %vm924_vm5, %v770_v30 }
 0x1bd   : > { %1095 = vmatpush.msra.mxu0 %v862_v33  ;;  %v1169_v33 = vld [vmem:[%s2215_s9] sm:$0xff] }
 0x1be   : > { %1519 = vmatmul.msk.f32.vlgmr.msrb.gmra.mxu1 %vm924_vm5, %v658_v34  ;;  %v1171_v34 = vld [vmem:[%s2215_s9 + $0x10] sm:$0xff] }
 0x1bf   : > { %1118 = vmatpush.msra.mxu1 %v882_v32  ;;  %v789_v38 = vpop.f32.mrf.mxu2  ;;  %1191 = vmatpush.msrb.mxu0 %v1169_v33  ;;  %v1386_v33 = vld [vmem:[%s2221_s15 + $0x28] sm:$0xff] }
 0x1c0   : > { %v790_v40 = vadd.f32 %v1587_v35, %v789_v38  ;;  %v809_v41 = vpop.f32.mrf.mxu3  ;;  %v1170_v35 = vld [vmem:[%s2215_s9 + $0x8] sm:$0xff] }
 0x1c1   : > { %v810_v42 = vadd.f32 %v1588_v36, %v809_v41  ;;  %1214 = vmatpush.msrb.mxu1 %v1170_v35  ;;  %v1172_v36 = vld [vmem:[%s2215_s9 + $0x18] sm:$0xff] }
 0x1c2   : > { %1520 = vmatpush.xpose.msk.msra.mxu2 %vm924_vm5, %v790_v40 }
 0x1c3   : > { %1522 = vmatpush.xpose.msk.msra.mxu3 %vm924_vm5, %v810_v42 }
 0x1c5   : > { %1521 = vmatmul.msk.f32.vlgmr.msra.gmra.mxu2 %vm924_vm5, %v678_v43 }
 0x1c6   : > { %1523 = vmatmul.msk.f32.vlgmr.msra.gmra.mxu3 %vm924_vm5, %v698_v44 }
 0x1c7   : > { %v901_v47 = vpop.f32.mrf.mxu2 }
 0x1c8   : > { %v902_v48 = vadd.f32 %v1589_v45, %v901_v47  ;;  %v921_v49 = vpop.f32.mrf.mxu3 }
 0x1c9   : > { %v922_v50 = vadd.f32 %v1590_v46, %v921_v49 }
 0x1ca   : > { %1141 = vmatpush.msrb.mxu2 %v902_v48 }
 0x1cb   : > { %1164 = vmatpush.msrb.mxu3 %v922_v50  ;;  %v1591_v50 = vld [vmem:[%s2216_s10] ss:$0 sm:$0xff] }
 0x1cc   : > { %1237 = vmatpush.msra.mxu2 %v1171_v34  ;;  %v1385_v34 = vld [vmem:[%s2221_s15 + $0x20] sm:$0xff] }
 0x1cd   : > { %1260 = vmatpush.msra.mxu3 %v1172_v36 }
 0x234   : > { %v948_v51 = vpop.f32.mrf.mxu0 }
 0x235   : > { %v1029_v52 = vmul.f32 0.35355338, %v948_v51 }
 0x237   : > { %v1033_v53 = vsel %vm924_vm5, %v1029_v52, -inf }
 0x238   : > { %1034 = vmax.xlane.f32.xlu2 %v1033_v53 }
 0x23b   : > { %v974_v54 = vpop.f32.mrf.mxu1 }
 0x23c   : > { %v1030_v55 = vmul.f32 0.35355338, %v974_v54 }
 0x23e   : > { %v1036_v56 = vsel %vm924_vm5, %v1030_v55, -inf }
 0x240   : > { %1037 = vmax.xlane.f32.xlu2 %v1036_v56 }
 0x248   : > { %v1000_v57 = vpop.f32.mrf.mxu2 }
 0x249   : > { %v1031_v58 = vmul.f32 0.35355338, %v1000_v57  ;;  %v1026_v60 = vpop.f32.mrf.mxu3 }
 0x24a   : > { %v1032_v61 = vmul.f32 0.35355338, %v1026_v60 }
 0x24b   : > { %v1039_v59 = vsel %vm924_vm5, %v1031_v58, -inf }
 0x24c   : > { %1040 = vmax.xlane.f32.xlu1 %v1039_v59  ;;  %v1042_v62 = vsel %vm924_vm5, %v1032_v61, -inf }
 0x254   : > { %1043 = vmax.xlane.f32.xlu1 %v1042_v62  ;;  %v1311_v62 = vld [vmem:[%s2219_s13 + $0x8] sm:$0xff] }
 0x2ab   : > { %v1035_v63 = vpop.xlane.xlu2 %1034 }
 0x2ac   : > { %v1045_v1 = vsub.f32 %v1029_v52, %v1035_v63  ;;  %v1310_v63 = vld [vmem:[%s2219_s13] sm:$0xff] }
 0x2ae   : > { %v1049_v2 = vmul.f32 1.442695, %v1045_v1 }
 0x2b0   : > { %1600 = vpow2.f32 %v1049_v2 }
 0x2b3   : > { %v1038_v5 = vpop.xlane.xlu2 %1037 }
 0x2b4   : > { %v1046_v9 = vsub.f32 %v1030_v55, %v1038_v5 }
 0x2b6   : > { %v1601_v3 = vpop.eup %1600  ;;  %v1051_v11 = vmul.f32 1.442695, %v1046_v9 }
 0x2b7   : > { %v1057_v4 = vsel %vm924_vm5, %v1601_v3, 0.0 }
 0x2b8   : > { %1058 = vadd.xlane.f32.xlu2 %v1057_v4 }
 0x2bf   : > { %v1041_v6 = vpop.xlane.xlu1 %1040 }
 0x2c0   : > { %v1047_v7 = vsub.f32 %v1031_v58, %v1041_v6 }
 0x2c2   : > { %v1053_v10 = vmul.f32 1.442695, %v1047_v7 }
 0x2c4   : > { %1602 = vpow2.f32 %v1053_v10 }
 0x2c5   : > { %1604 = vpow2.f32 %v1051_v11  ;;  %v1592_v11 = vld [vmem:[%s2217_s11] ss:$0 sm:$0xff] }
 0x2c7   : > { %v1044_v12 = vpop.xlane.xlu1 %1043 }
 0x2c8   : > { %v1048_v13 = vsub.f32 %v1032_v61, %v1044_v12  ;;  %v1313_v61 = vld [vmem:[%s2219_s13 + $0x18] sm:$0xff] }
 0x2ca   : > { %v1603_v14 = vpop.eup %1602  ;;  %v1055_v15 = vmul.f32 1.442695, %v1048_v13 }
 0x2cb   : > { %v1063_v16 = vsel %vm924_vm5, %v1603_v14, 0.0  ;;  %v1605_v17 = vpop.eup %1604 }
 0x2cc   : > { %1606 = vpow2.f32 %v1055_v15  ;;  %1064 = vadd.xlane.f32.xlu0 %v1063_v16  ;;  %v1060_v20 = vsel %vm924_vm5, %v1605_v17, 0.0  ;;  %v1396_v16 = vld [vmem:[%s2221_s15 + $0x78] sm:$0xff] }
 0x2d2   : > { %v1607_v18 = vpop.eup %1606 }
 0x2d3   : > { %v1066_v19 = vsel %vm924_vm5, %v1607_v18, 0.0 }
 0x2d4   : > { %1067 = vadd.xlane.f32.xlu1 %v1066_v19  ;;  %1061 = vadd.xlane.f32.xlu0 %v1060_v20  ;;  %v1394_v19 = vld [vmem:[%s2221_s15 + $0x68] sm:$0xff] }
 0x32b   : > { %v1059_v21 = vpop.xlane.xlu2 %1058 }
 0x32c   : > { %1608 = vrcp.f32 %v1059_v21  ;;  %v1393_v21 = vld [vmem:[%s2221_s15 + $0x60] sm:$0xff] }
 0x332   : > { %v1609_v22 = vpop.eup %1608 }
 0x333   : > { %v1073_v23 = vmul.f32 %v1609_v22, %v1601_v3 }
 0x335   : > { %1524 = vmatmul.msk.f32.vlgmr.msra.gmra.mxu0 %vm924_vm5, %v1073_v23  ;;  %v1392_v23 = vld [vmem:[%s2221_s15 + $0x58] sm:$0xff] }
 0x336   : > { %1333 = vmatpush.msra.mxu0 %v1313_v61 }
 0x33f   : > { %v1065_v24 = vpop.xlane.xlu0 %1064 }
 0x340   : > { %1610 = vrcp.f32 %v1065_v24 }
 0x346   : > { %v1611_v25 = vpop.eup %1610 }
 0x347   : > { %v1075_v26 = vmul.f32 %v1611_v25, %v1603_v14  ;;  %v1068_v27 = vpop.xlane.xlu1 %1067  ;;  %v1062_v28 = vpop.xlane.xlu0 %1061  ;;  %v1391_v25 = vld [vmem:[%s2221_s15 + $0x50] sm:$0xff] }
 0x348   : > { %1612 = vrcp.f32 %v1068_v27  ;;  %v1390_v27 = vld [vmem:[%s2221_s15 + $0x48] sm:$0xff] }
 0x349   : > { %1614 = vrcp.f32 %v1062_v28  ;;  %1526 = vmatmul.msk.f32.vlgmr.msrb.gmra.mxu2 %vm924_vm5, %v1075_v26 }
 0x34e   : > { %v1613_v29 = vpop.eup %1612 }
 0x34f   : > { %v1615_v30 = vpop.eup %1614  ;;  %v1076_v31 = vmul.f32 %v1613_v29, %v1607_v18  ;;  %v1594_v18 = vld [vmem:[%s2220_s14] ss:$0 sm:$0xff] }
 0x350   : > { %v1074_v32 = vmul.f32 %v1615_v30, %v1605_v17  ;;  %v1395_v17 = vld [vmem:[%s2221_s15 + $0x70] sm:$0xff]  ;;  %v1389_v29 = vld [vmem:[%s2221_s15 + $0x40] sm:$0xff] }
 0x351   : > { %1527 = vmatmul.msk.f32.vlgmr.msrb.gmra.mxu3 %vm924_vm5, %v1076_v31  ;;  %v1388_v31 = vld [vmem:[%s2221_s15 + $0x38] sm:$0xff] }
 0x352   : > { %1525 = vmatmul.msk.f32.vlgmr.msra.gmra.mxu1 %vm924_vm5, %v1074_v32  ;;  %v1387_v32 = vld [vmem:[%s2221_s15 + $0x30] sm:$0xff] }
 0x353   : > { %1401 = vmatpush.msra.mxu1 %v1396_v16 }
 0x355   : > { %1402 = vmatpush.msra.mxu1 %v1395_v17 }
 0x357   : > { %1403 = vmatpush.msra.mxu1 %v1394_v19 }
 0x359   : > { %1404 = vmatpush.msra.mxu1 %v1393_v21 }
 0x35b   : > { %1405 = vmatpush.msra.mxu1 %v1392_v23 }
 0x35d   : > { %1406 = vmatpush.msra.mxu1 %v1391_v25 }
 0x35f   : > { %1407 = vmatpush.msra.mxu1 %v1390_v27 }
 0x361   : > { %1408 = vmatpush.msra.mxu1 %v1389_v29 }
 0x363   : > { %1409 = vmatpush.msra.mxu1 %v1388_v31 }
 0x365   : > { %1410 = vmatpush.msra.mxu1 %v1387_v32 }
 0x367   : > { %1411 = vmatpush.msra.mxu1 %v1386_v33 }
 0x369   : > { %1412 = vmatpush.msra.mxu1 %v1385_v34 }
 0x3b2   : > { %v1097_v37 = vpop.f32.mrf.mxu0 }
 0x3b3   : > { %1528 = vmatmul.msk.f32.vlgmr.msrb.gmra.mxu0 %vm924_vm5, %v1097_v37  ;;  %v1384_v37 = vld [vmem:[%s2221_s15 + $0x18] sm:$0xff] }
 0x3b4   : > { %1413 = vmatpush.msra.mxu1 %v1384_v37 }
 0x3cc   : > { %v1143_v38 = vpop.f32.mrf.mxu2 }
 0x3cd   : > { %1530 = vmatmul.msk.f32.vlgmr.msra.gmra.mxu2 %vm924_vm5, %v1143_v38 }
 0x3cf   : > { %v1120_v39 = vpop.f32.mrf.mxu1 }
 0x3d0   : > { %1529 = vmatmul.msk.f32.vlgmr.msrb.gmra.mxu1 %vm924_vm5, %v1120_v39  ;;  %v1383_v39 = vld [vmem:[%s2221_s15 + $0x10] sm:$0xff] }
 0x3d1   : > { %1414 = vmatpush.msra.mxu1 %v1383_v39 }
 0x3d4   : > { %v1166_v40 = vpop.f32.mrf.mxu3 }
 0x3d5   : > { %1531 = vmatmul.msk.f32.vlgmr.msra.gmra.mxu3 %vm924_vm5, %v1166_v40 }
 0x430   : > { %v1193_v42 = vpop.f32.mrf.mxu0 }
 0x431   : > { %v1265_v45 = vsel %vm547_vm0, %v1193_v42, 0.0 }
 0x44d   : > { %v1216_v41 = vpop.f32.mrf.mxu1 }
 0x44e   : > { %v1266_v44 = vsel %vm547_vm0, %v1216_v41, 0.0 }
 0x44f   : > { %v1267_v47 = vadd.f32 %v1266_v44, %v1265_v45  ;;  %v1381_v44 = vld [vmem:[%s2221_s15] sm:$0xff] }
 0x450   : > { %v1239_v43 = vpop.f32.mrf.mxu2 }
 0x451   : > { %v1268_v46 = vsel %vm547_vm0, %v1239_v43, 0.0  ;;  %v1382_v43 = vld [vmem:[%s2221_s15 + $0x8] sm:$0xff] }
 0x452   : > { %v1269_v48 = vadd.f32 %v1268_v46, %v1267_v47  ;;  %1415 = vmatpush.msra.mxu1 %v1382_v43 }
 0x454   : > { %1416 = vmatpush.msra.mxu1 %v1381_v44 }
 0x458   : > { %v1262_v49 = vpop.f32.mrf.mxu3 }
 0x459   : > { %v1270_v51 = vsel %vm547_vm0, %v1262_v49, 0.0 }
 0x45a   : > { %v1271_v52 = vadd.f32 %v1270_v51, %v1269_v48 }
 0x45c   : > { %v1276_v53 = vadd.f32 %v1591_v50, %v1271_v52 }
 0x45e   : > { %v2087_v54 = vadd.f32 %v1276_v53, %v1830_v0  ;;  %v1312_v0 = vld [vmem:[%s2219_s13 + $0x10] sm:$0xff] }
 0x45f   : > { %1334 = vmatpush.msra.mxu0 %v1312_v0 }
 0x460   : > { %v1280_v55 = vsel %vm547_vm0, %v2087_v54, 0.0 }
 0x461   : > { %1281 = vadd.xlane.f32.xlu1 %v1280_v55  ;;  %1335 = vmatpush.msra.mxu0 %v1311_v62 }
 0x463   : > { %1336 = vmatpush.msra.mxu0 %v1310_v63 }
 0x4d4   : > { %v1282_v56 = vpop.xlane.xlu1 %1281 }
 0x4d5   : > { %v1283_v57 = vmul.f32 %v1282_v56, %v1834_v8 }
 0x4d7   : > { %v1284_v58 = vsub.f32 %v2087_v54, %v1283_v57 }
 0x4d9   : > { %v1285_v59 = vmul.f32 %v1284_v58, %v1284_v58 }
 0x4db   : > { %v1286_v60 = vsel %vm547_vm0, %v1285_v59, 0.0 }
 0x4dc   : > { %1287 = vadd.xlane.f32.xlu2 %v1286_v60 }
 0x54f   : > { %v1288_v1 = vpop.xlane.xlu2 %1287 }
 0x550   : > { %v1289_v2 = vmul.f32 %v1288_v1, %v1834_v8  ;;  %v1593_v8 = vld [vmem:[%s2218_s12] ss:$0 sm:$0xff] }
 0x552   : > { %v1290_v3 = vadd.f32 1e-05, %v1289_v2 }
 0x554   : > { %1616 = vrsqrt.f32 %v1290_v3  ;;  %vm1297_vm7 = vweird.f32 %v1290_v3 }
 0x55a   : > { %v1617_v4 = vpop.eup %1616 }
 0x55b   : > { %v1292_v5 = vmul.f32 %v1617_v4, %v1290_v3  ;;  %vm1298_vm6 = vweird.f32 %v1617_v4 }
 0x55c   : > { %vm1299_vm8 = vmor %vm1297_vm7, %vm1298_vm6 }
 0x55d   : > { %v1293_v6 = vmul.f32 %v1617_v4, %v1292_v5 }
 0x55f   : > { %v1294_v7 = vmul.f32 0.5, %v1293_v6  ;;  %v1595_v6 = vld [vmem:[%s2222_s16] ss:$0 sm:$0xff] }
 0x561   : > { %v1295_v9 = vsub.f32 1.5, %v1294_v7 }
 0x563   : > { %v1296_v10 = vmul.f32 %v1617_v4, %v1295_v9 }
 0x565   : > { %v1300_v12 = vsel %vm1299_vm8, %v1617_v4, %v1296_v10 }
 0x566   : > { %v1301_v13 = vmul.f32 %v1300_v12, %v1284_v58 }
 0x568   : > { %v1305_v14 = vmul.f32 %v1592_v11, %v1301_v13 }
 0x56a   : > { %v1309_v15 = vadd.f32 %v1593_v8, %v1305_v14 }
 0x56c   : > { %1532 = vmatmul.msk.f32.vlgmr.msra.gmra.mxu0 %vm547_vm0, %v1309_v15 }
 0x5e9   : > { %v1338_v20 = vpop.f32.mrf.mxu0 }
 0x5ea   : > { %v2129_v22 = vadd.f32 %v1594_v18, %v1338_v20 }
 0x5ec   : > { %v1342_v24 = vmul.f32 0.70710677, %v2129_v22  ;;  %v1341_v3 = vmul.f32 0.5, %v2129_v22 }
 0x5ee   : > { %v1343_v26 = vand.u32 2147483647, %v1342_v24  ;;  %vm1376_vm13 = vcmp.lt.f32.partialorder %v1342_v24, 0.0 }
 0x5f0   : > { %v1344_v28 = vmul.f32 0.3275911, %v1343_v26  ;;  %v1370_v49 = vsub.f32 0.0, %v1343_v26 }
 0x5f2   : > { %v1345_v30 = vadd.f32 1.0, %v1344_v28  ;;  %v1371_v52 = vmul.f32 %v1370_v49, %v1343_v26 }
 0x5f4   : > { %1618 = vrcp.f32 %v1345_v30  ;;  %v1357_v40 = vand.u32 2147483648, %v1345_v30  ;;  %v1355_v42 = vand.u32 2147483647, %v1345_v30  ;;  %vm1351_vm10 = vweird.f32 %v1345_v30 }
 0x5f5   : > { %v1372_v56 = vmul.f32 1.442695, %v1371_v52 }
 0x5f6   : > { %v1358_v46 = vor.u32 1.1754944e-38, %v1357_v40  ;;  %vm1356_vm12 = vcmp.eq.f32.partialorder %v1355_v42, 8.507059e+37 }
 0x5f7   : > { %1620 = vpow2.f32 %v1372_v56 }
 0x5fa   : > { %v1619_v35 = vpop.eup %1618 }
 0x5fb   : > { %v1347_v36 = vmul.f32 %v1619_v35, %v1345_v30  ;;  %vm1352_vm9 = vweird.f32 %v1619_v35 }
 0x5fc   : > { %vm1353_vm11 = vmor %vm1351_vm10, %vm1352_vm9 }
 0x5fd   : > { %v1348_v38 = vsub.f32 1.0, %v1347_v36  ;;  %v1621_v0 = vpop.eup %1620 }
 0x5ff   : > { %v1349_v41 = vmul.f32 %v1619_v35, %v1348_v38 }
 0x601   : > { %v1350_v45 = vadd.f32 %v1619_v35, %v1349_v41 }
 0x603   : > { %v1354_v47 = vsel %vm1353_vm11, %v1619_v35, %v1350_v45 }
 0x604   : > { %v1359_v48 = vsel %vm1356_vm12, %v1358_v46, %v1354_v47 }
 0x605   : > { %v1361_v50 = vmul.f32 1.0614054, %v1359_v48 }
 0x607   : > { %v1362_v51 = vadd.f32 -1.4531521, %v1361_v50 }
 0x609   : > { %v1363_v53 = vmul.f32 %v1362_v51, %v1359_v48 }
 0x60b   : > { %v1364_v55 = vadd.f32 1.4214138, %v1363_v53 }
 0x60d   : > { %v1365_v57 = vmul.f32 %v1364_v55, %v1359_v48 }
 0x60f   : > { %v1366_v58 = vadd.f32 -0.28449672, %v1365_v57 }
 0x611   : > { %v1367_v59 = vmul.f32 %v1366_v58, %v1359_v48 }
 0x613   : > { %v1368_v60 = vadd.f32 0.2548296, %v1367_v59 }
 0x615   : > { %v1369_v61 = vmul.f32 %v1368_v60, %v1359_v48 }
 0x617   : > { %v1374_v62 = vmul.f32 %v1621_v0, %v1369_v61 }
 0x619   : > { %v1375_v63 = vsub.f32 1.0, %v1374_v62 }
 0x61b   : > { %v1377_v1 = vsub.f32 0.0, %v1375_v63 }
 0x61d   : > { %v1378_v2 = vsel %vm1376_vm13, %v1377_v1, %v1375_v63 }
 0x61e   : > { %v1379_v4 = vadd.f32 1.0, %v1378_v2 }
 0x620   : > { %v1380_v5 = vmul.f32 %v1379_v4, %v1341_v3 }
 0x622   : > { %1417 = vmatmul.f32.vlgmr.msra.gmra.mxu1 %v1380_v5 }
 0x69f   : > { %v1418_v7 = vpop.f32.mrf.mxu1 }
 0x6a0   : > { %v1419_v9 = vadd.f32 %v1595_v6, %v1418_v7 }
 0x6a2   : > { %v1421_v10 = vadd.f32 %v1419_v9, %v2087_v54 }
 0x6a4   : > { %1422 = vst.msk [vmem:[%s539_s20] sm:$0xff] %vm547_vm0, %v1421_v10 }
 0x6a5   : > { %1649 = shalt.err (!%p1646_p3)
}
 0x6a6   : > { %1537 = dma.vmem_to_hbm [thread:$0]  (%p1815_p5), %s1437_s21, 128, %s1439_s2, %s1424_s28  }
 0x6a7 PF: > { %p1543_p4 = scmp.ge.s32.totalorder %s1684_s27, 2  ;;  %s1450_s0 = sand.u32 1, %s1672_s24  }
 0x6a8   : > { %s1451_s20 = scalar_lea.sflag [#allocation3], %s1450_s0 }
 0x6a9   : > { %p1540_p7 = pnand %p1543_p4, %p1819_p6 }
 0x6ab   : > { %p1541_p8 = pneg %p1540_p7 }
 0x6ad   : > { %1667 = dma.done.wait (%p1541_p8), %s1451_s20, 128  }
 0x6ae   : > { %1669 = vsyncadd (%p1541_p8), %s1451_s20, 4294967168  ;;  %s2243_s27 = sld [smem:[#allocation6_spill]]  ;;  %s2246_s24 = smov %s1676_s25 }
 0x6af   : > { %s2244_s3 = sld [smem:[#allocation5_spill]] }
 0x6b0   : > { %s2245_s26 = sld [smem:[#allocation7_spill]] }
 0x6b4   : > { %p27_p9 = scmp.ge.s32.totalorder %s2243_s27, 4  }
 0x6b5   : > { %s2247_s25 = smov %s2244_s3 }
 0x6b6   :  { %29 = sbr.rel (!%p27_p9) target bundleno = 8 (0x8), region = 123 }
 0x6bb   :  { %1457 = vsyncpa [#allocation3], 1 }
 0x6bc   :  { %1459 = vsyncpa [#allocation3 + $0x1], 1 }

</bundles_post_ra>
